<compile_context>
chip_gen: v6e
topology: v6e:2x2x1
jax: 0.10.0
libtpu: 0.0.40
codegen_flags: <defaults>
</compile_context>

<pallas_src>
import numpy as np
import jax
import jax.numpy as jnp
from jax.experimental import pallas as pl
from jax.experimental.pallas import tpu as pltpu

# ---- model hyper-params (shrunk from the defaults enc_dim=512 / feature_dim=256) ----
ENC_DIM = 64          # enc_dim
FEAT_DIM = 32         # feature_dim
SR = 16000
WIN_MS = 2
WIN = SR * WIN_MS // 1000   # 32 samples  (self.win)
STRIDE = WIN // 2           # 16 samples  (self.stride)


def _tensorcores_per_chip():
    """2 on v7x (split the batch across cores), else 1 (collapse the grid)."""
    try:
        kind = jax.devices()[0].device_kind.lower()
    except Exception:
        return 1
    return 2 if ("v7" in kind or "tpu7" in kind) else 1


def _make_fused_kernel(Bc, L, Tv, E):
    def kernel(frames_ref, vis_ref, interp_ref,
               w_fa_ref, w_v_ref, w_enc_cat_ref, w_dec_ref, out_ref):
        # ---- audio path ---------------------------------------------------
        # Conv1d(1, E, win, stride=win//2, bias=False) as a framed matmul,
        # fused with the audio branch of the mask head in one [win, 2E] matmul:
        # w_enc_cat = [w_enc | w_enc @ w_a]  (pre-folded in the wrapper).
        encla = jnp.dot(frames_ref[...], w_enc_cat_ref[...],
                        preferred_element_type=jnp.float32)             # [Bc*L, 2E]
        enc = encla[:, :E]                                              # [Bc*L, E]
        logits_a = encla[:, E:]                                         # [Bc*L, E]

        # ---- visual path ----------------------------------------------------
        # stand-in frontend: pixels @ (w_front @ w_adapt) -> tanh -> enc space.
        h = jnp.tanh(jnp.dot(vis_ref[...], w_fa_ref[...],
                             preferred_element_type=jnp.float32))       # [Bc*Tv, F]
        v_e = jnp.dot(h.astype(jnp.bfloat16), w_v_ref[...],
                      preferred_element_type=jnp.float32)               # [Bc*Tv, E]

        # F.interpolate(mode='linear', align_corners=False) as a batched matmul
        # with a precomputed [L, Tv] weight matrix.  w_v is applied BEFORE the
        # interpolation (interp is linear, so the order is mathematically equal
        # and projects on Tv rows instead of L rows).
        v_e3 = v_e.reshape(Bc, Tv, E).astype(jnp.bfloat16)              # [Bc, Tv, E]
        interp_b = jnp.broadcast_to(interp_ref[...], (Bc, L, Tv))
        vis_l = jnp.einsum("blt,bte->ble", interp_b, v_e3,
                           preferred_element_type=jnp.float32)          # [Bc, L, E]
        logits_v = vis_l.reshape(Bc * L, E)                             # [Bc*L, E]

        # ---- separator stand-in: sigmoid mask, masking, decoder matmul ------
        mask = jax.nn.sigmoid(logits_a + logits_v)                      # f32
        masked = (enc * mask).astype(jnp.bfloat16)                      # [Bc*L, E]
        # ConvTranspose1d(E, 1, win, stride=win//2, bias=False) -> per-frame
        # matmul; the 50%-overlap-add is two static slice-adds in the wrapper.
        out_ref[...] = jnp.dot(masked, w_dec_ref[...],
                               preferred_element_type=jnp.float32
                               ).astype(out_ref.dtype)                  # [Bc*L, win]
    return kernel


def pad_signal(x, win, stride):
    """Mirror of AudioVisualModel.pad_signal for a [B, T] input."""
    B, n = x.shape
    rest = win - (stride + n % win) % win
    if rest > 0:
        x = jnp.concatenate([x, jnp.zeros((B, rest), x.dtype)], axis=1)
    aux = jnp.zeros((B, stride), x.dtype)
    x = jnp.concatenate([aux, x, aux], axis=1)
    return x, rest


def linear_interp_matrix(t_in, t_out):
    """Row-stochastic matrix reproducing F.interpolate(mode='linear', align_corners=False)."""
    scale = t_in / t_out
    i = np.arange(t_out, dtype=np.float64)
    src = np.clip((i + 0.5) * scale - 0.5, 0.0, t_in - 1)
    i0 = np.floor(src).astype(np.int64)
    i1 = np.minimum(i0 + 1, t_in - 1)
    w1 = (src - i0).astype(np.float32)
    w0 = 1.0 - w1
    M = np.zeros((t_out, t_in), dtype=np.float32)
    M[np.arange(t_out), i0] += w0
    M[np.arange(t_out), i1] += w1
    return jnp.asarray(M)


def init_params(key, hw):
    ks = jax.random.split(key, 6)
    s = 0.05
    return {
        "w_front": jax.random.normal(ks[0], (hw, FEAT_DIM), jnp.float32) * s,
        "w_adapt": jax.random.normal(ks[1], (FEAT_DIM, FEAT_DIM), jnp.float32) * s,
        "w_enc":   jax.random.normal(ks[2], (WIN, ENC_DIM), jnp.float32) * s,
        "w_a":     jax.random.normal(ks[3], (ENC_DIM, ENC_DIM), jnp.float32) * s,
        "w_v":     jax.random.normal(ks[4], (FEAT_DIM, ENC_DIM), jnp.float32) * s,
        "w_dec":   jax.random.normal(ks[5], (ENC_DIM, WIN), jnp.float32) * s,
    }


def audio_visual_forward(mixture, visual, params):
    B, nsample = mixture.shape
    padded, rest = pad_signal(mixture, WIN, STRIDE)
    t_pad = padded.shape[1]
    assert t_pad % STRIDE == 0
    L = (t_pad - WIN) // STRIDE + 1          # == t_pad // STRIDE - 1

    # 50%-overlap framing via reshape + slice + concat (no XLA gather, no
    # [B, L, WIN] scatter): frame l = padded[l*STRIDE : l*STRIDE + WIN].
    x2 = padded.reshape(B, L + 1, STRIDE)
    frames = jnp.concatenate([x2[:, :-1], x2[:, 1:]], axis=-1)          # [B, L, WIN]
    frames2d = frames.reshape(B * L, WIN).astype(jnp.bfloat16)

    Tv, H, W = visual.shape[1], visual.shape[2], visual.shape[3]
    hw = H * W
    vis2d = visual.reshape(B * Tv, hw).astype(jnp.bfloat16)
    interp = linear_interp_matrix(Tv, L).astype(jnp.bfloat16)           # [L, Tv]

    # Pre-folded weight chains (done once, outside the kernel):
    #   w_fa      = w_front @ w_adapt         (no nonlinearity between them)
    #   w_enc_cat = [w_enc | w_enc @ w_a]     (fuses encoder + audio mask branch)
    w_fa = (params["w_front"] @ params["w_adapt"]).astype(jnp.bfloat16)
    w_enc_cat = jnp.concatenate(
        [params["w_enc"], params["w_enc"] @ params["w_a"]], axis=1
    ).astype(jnp.bfloat16)                                              # [WIN, 2E]
    w_v = params["w_v"].astype(jnp.bfloat16)
    w_dec = params["w_dec"].astype(jnp.bfloat16)

    # Batch chunking: one chunk per TensorCore.  v5e/v6e -> single grid step
    # (whole batch folded into the matmul M dim); v7x -> 2 parallel chunks.
    ncores = _tensorcores_per_chip()
    n_blocks = ncores if (ncores > 1 and B % ncores == 0) else 1
    Bc = B // n_blocks

    full2d = lambda r, c: pl.BlockSpec((r, c), lambda g: (0, 0))
    kernel = _make_fused_kernel(Bc, L, Tv, ENC_DIM)

    out2d = pl.pallas_call(
        kernel,
        out_shape=jax.ShapeDtypeStruct((B * L, WIN), jnp.float32),
        grid=(n_blocks,),
        in_specs=[
            pl.BlockSpec((Bc * L, WIN), lambda g: (g, 0)),    # framed audio
            pl.BlockSpec((Bc * Tv, hw), lambda g: (g, 0)),    # video pixels
            full2d(L, Tv),                                    # interp matrix
            full2d(hw, FEAT_DIM),                             # w_front @ w_adapt
            full2d(FEAT_DIM, ENC_DIM),                        # w_v
            full2d(WIN, 2 * ENC_DIM),                         # [w_enc | w_enc @ w_a]
            full2d(ENC_DIM, WIN),                             # w_dec
        ],
        out_specs=pl.BlockSpec((Bc * L, WIN), lambda g: (g, 0)),
        compiler_params=pltpu.CompilerParams(
            dimension_semantics=("parallel",)),
    )(frames2d, vis2d, interp, w_fa, w_v, w_enc_cat, w_dec)

    # ConvTranspose1d overlap-add (win == 2*stride) as two static slice-adds:
    # frame l's first half lands at offset l*STRIDE, second half at (l+1)*STRIDE.
    dec = out2d.reshape(B, L, WIN)
    a = dec[:, :, :STRIDE].reshape(B, L * STRIDE)
    b = dec[:, :, STRIDE:].reshape(B, L * STRIDE)
    # output = output[:, stride : -(rest + stride)]  ==  positions [S, S+nsample)
    out = a[:, STRIDE:STRIDE + nsample] + b[:, :nsample]
    return out


if __name__ == "__main__":
    key = jax.random.PRNGKey(0)
    k_mix, k_vis, k_par = jax.random.split(key, 3)

    B = 2
    NSAMPLE = 224          # -> L = 16 encoder frames after pad_signal
    TV, H, W = 8, 16, 16   # small video: 8 frames of 16x16

    mixture = jax.random.normal(k_mix, (B, NSAMPLE), jnp.float32)
    visual = jax.random.normal(k_vis, (B, TV, H, W), jnp.float32)
    params = init_params(k_par, H * W)

    out = jax.jit(audio_visual_forward)(mixture, visual, params)
    out = jax.block_until_ready(out)
    assert out.shape == (B, NSAMPLE), out.shape
    assert bool(jnp.all(jnp.isfinite(out)))
    print("KERNEL_OK")
</pallas_src>

<mosaic_0001>
module attributes {stable_mosaic.version = 11 : i64} {
  func.func @kernel(%arg0: i32, %arg1: memref<32x32xbf16, #tpu.memory_space<vmem>>, %arg2: memref<16x256xbf16, #tpu.memory_space<vmem>>, %arg3: memref<16x8xbf16, #tpu.memory_space<vmem>>, %arg4: memref<256x32xbf16, #tpu.memory_space<vmem>>, %arg5: memref<32x64xbf16, #tpu.memory_space<vmem>>, %arg6: memref<32x128xbf16, #tpu.memory_space<vmem>>, %arg7: memref<64x32xbf16, #tpu.memory_space<vmem>>, %arg8: memref<32x32xf32, #tpu.memory_space<vmem>>) attributes {dimension_semantics = [#tpu.dimension_semantics<parallel>], iteration_bounds = array<i64: 1>, scalar_prefetch = 0 : i64, scratch_operands = 0 : i64, tpu.core_type = #tpu.core_type<tc>, window_params = [{transform_indices = @transform_0, window_bounds = array<i64: 32, 32>}, {transform_indices = @transform_1, window_bounds = array<i64: 16, 256>}, {pipeline_mode = #tpu.pipeline_mode<synchronous>, transform_indices = @transform_2, window_bounds = array<i64: 16, 8>}, {pipeline_mode = #tpu.pipeline_mode<synchronous>, transform_indices = @transform_3, window_bounds = array<i64: 256, 32>}, {pipeline_mode = #tpu.pipeline_mode<synchronous>, transform_indices = @transform_4, window_bounds = array<i64: 32, 64>}, {pipeline_mode = #tpu.pipeline_mode<synchronous>, transform_indices = @transform_5, window_bounds = array<i64: 32, 128>}, {pipeline_mode = #tpu.pipeline_mode<synchronous>, transform_indices = @transform_6, window_bounds = array<i64: 64, 32>}, {transform_indices = @transform_7, window_bounds = array<i64: 32, 32>}]} {
    %c0 = arith.constant 0 : index
    %c0_0 = arith.constant 0 : index
    %0 = vector.load %arg1[%c0, %c0_0] : memref<32x32xbf16, #tpu.memory_space<vmem>>, vector<32x32xbf16>
    %c0_1 = arith.constant 0 : index
    %c0_2 = arith.constant 0 : index
    %1 = vector.load %arg6[%c0_1, %c0_2] : memref<32x128xbf16, #tpu.memory_space<vmem>>, vector<32x128xbf16>
    %cst = arith.constant dense<0.000000e+00> : vector<32x128xf32>
    %2 = tpu.matmul %0, %1, %cst {dimension_numbers = #tpu.dot_dimension_numbers<[1], [0], [0], [1], [0, 0, 1, 1], [], []>} : vector<32x32xbf16>, vector<32x128xbf16>, vector<32x128xf32> -> vector<32x128xf32>
    %3 = vector.extract_strided_slice %2 {offsets = [0, 0], sizes = [32, 64], strides = [1, 1]} : vector<32x128xf32> to vector<32x64xf32>
    %4 = vector.extract_strided_slice %2 {offsets = [0, 64], sizes = [32, 64], strides = [1, 1]} : vector<32x128xf32> to vector<32x64xf32>
    %c0_3 = arith.constant 0 : index
    %c0_4 = arith.constant 0 : index
    %5 = vector.load %arg2[%c0_3, %c0_4] : memref<16x256xbf16, #tpu.memory_space<vmem>>, vector<16x256xbf16>
    %c0_5 = arith.constant 0 : index
    %c0_6 = arith.constant 0 : index
    %6 = vector.load %arg4[%c0_5, %c0_6] : memref<256x32xbf16, #tpu.memory_space<vmem>>, vector<256x32xbf16>
    %cst_7 = arith.constant dense<0.000000e+00> : vector<16x32xf32>
    %7 = tpu.matmul %5, %6, %cst_7 {dimension_numbers = #tpu.dot_dimension_numbers<[1], [0], [0], [1], [0, 0, 1, 1], [], []>} : vector<16x256xbf16>, vector<256x32xbf16>, vector<16x32xf32> -> vector<16x32xf32>
    %8 = math.tanh %7 : vector<16x32xf32>
    %9 = arith.truncf %8 : vector<16x32xf32> to vector<16x32xbf16>
    %c0_8 = arith.constant 0 : index
    %c0_9 = arith.constant 0 : index
    %10 = vector.load %arg5[%c0_8, %c0_9] : memref<32x64xbf16, #tpu.memory_space<vmem>>, vector<32x64xbf16>
    %cst_10 = arith.constant dense<0.000000e+00> : vector<16x64xf32>
    %11 = tpu.matmul %9, %10, %cst_10 {dimension_numbers = #tpu.dot_dimension_numbers<[1], [0], [0], [1], [0, 0, 1, 1], [], []>} : vector<16x32xbf16>, vector<32x64xbf16>, vector<16x64xf32> -> vector<16x64xf32>
    %12 = vector.shape_cast %11 : vector<16x64xf32> to vector<2x8x64xf32>
    %13 = arith.truncf %12 : vector<2x8x64xf32> to vector<2x8x64xbf16>
    %c0_11 = arith.constant 0 : index
    %c0_12 = arith.constant 0 : index
    %14 = vector.load %arg3[%c0_11, %c0_12] : memref<16x8xbf16, #tpu.memory_space<vmem>>, vector<16x8xbf16>
    %15 = vector.shape_cast %14 : vector<16x8xbf16> to vector<1x16x8xbf16>
    %16 = vector.broadcast %15 : vector<1x16x8xbf16> to vector<2x16x8xbf16>
    "tpu.trace_start"() <{level = 10 : i32, message = "blt,bte->ble"}> : () -> ()
    %cst_13 = arith.constant dense<0.000000e+00> : vector<2x16x64xf32>
    %17 = tpu.matmul %16, %13, %cst_13 {dimension_numbers = #tpu.dot_dimension_numbers<[2], [1], [1], [2], [0, 0, 0, 1, 1, 2], [0], [0]>} : vector<2x16x8xbf16>, vector<2x8x64xbf16>, vector<2x16x64xf32> -> vector<2x16x64xf32>
    "tpu.trace_stop"() : () -> ()
    %18 = vector.shape_cast %17 : vector<2x16x64xf32> to vector<32x64xf32>
    %19 = arith.addf %4, %18 : vector<32x64xf32>
    %20 = arith.negf %19 : vector<32x64xf32>
    %21 = math.exp %20 : vector<32x64xf32>
    %cst_14 = arith.constant 1.000000e+00 : f32
    %22 = vector.broadcast %cst_14 : f32 to vector<32x64xf32>
    %23 = arith.addf %22, %21 : vector<32x64xf32>
    %24 = arith.divf %22, %23 : vector<32x64xf32>
    %25 = arith.mulf %3, %24 : vector<32x64xf32>
    %26 = arith.truncf %25 : vector<32x64xf32> to vector<32x64xbf16>
    %c0_15 = arith.constant 0 : index
    %c0_16 = arith.constant 0 : index
    %27 = vector.load %arg7[%c0_15, %c0_16] : memref<64x32xbf16, #tpu.memory_space<vmem>>, vector<64x32xbf16>
    %cst_17 = arith.constant dense<0.000000e+00> : vector<32x32xf32>
    %28 = tpu.matmul %26, %27, %cst_17 {dimension_numbers = #tpu.dot_dimension_numbers<[1], [0], [0], [1], [0, 0, 1, 1], [], []>} : vector<32x64xbf16>, vector<64x32xbf16>, vector<32x32xf32> -> vector<32x32xf32>
    %c0_18 = arith.constant 0 : index
    %c0_19 = arith.constant 0 : index
    %29 = vector.load %arg8[%c0_18, %c0_19] : memref<32x32xf32, #tpu.memory_space<vmem>>, vector<32x32xf32>
    tpu.vector_store %arg8[%c0_18, %c0_19], %28 {strides = array<i32>} : memref<32x32xf32, #tpu.memory_space<vmem>>, vector<32x32xf32>,
    return
  }
  func.func @transform_0(%arg0: i32) -> (i32, i32) {
    %c0_i32 = arith.constant 0 : i32
    %c0_i32_0 = arith.constant 0 : i32
    return %arg0, %c0_i32 : i32, i32
  }
  func.func @transform_1(%arg0: i32) -> (i32, i32) {
    %c0_i32 = arith.constant 0 : i32
    %c0_i32_0 = arith.constant 0 : i32
    return %arg0, %c0_i32 : i32, i32
  }
  func.func @transform_2(%arg0: i32) -> (i32, i32) {
    %c0_i32 = arith.constant 0 : i32
    %c0_i32_0 = arith.constant 0 : i32
    %c0_i32_1 = arith.constant 0 : i32
    return %c0_i32, %c0_i32_0 : i32, i32
  }
  func.func @transform_3(%arg0: i32) -> (i32, i32) {
    %c0_i32 = arith.constant 0 : i32
    %c0_i32_0 = arith.constant 0 : i32
    %c0_i32_1 = arith.constant 0 : i32
    return %c0_i32, %c0_i32_0 : i32, i32
  }
  func.func @transform_4(%arg0: i32) -> (i32, i32) {
    %c0_i32 = arith.constant 0 : i32
    %c0_i32_0 = arith.constant 0 : i32
    %c0_i32_1 = arith.constant 0 : i32
    return %c0_i32, %c0_i32_0 : i32, i32
  }
  func.func @transform_5(%arg0: i32) -> (i32, i32) {
    %c0_i32 = arith.constant 0 : i32
    %c0_i32_0 = arith.constant 0 : i32
    %c0_i32_1 = arith.constant 0 : i32
    return %c0_i32, %c0_i32_0 : i32, i32
  }
  func.func @transform_6(%arg0: i32) -> (i32, i32) {
    %c0_i32 = arith.constant 0 : i32
    %c0_i32_0 = arith.constant 0 : i32
    %c0_i32_1 = arith.constant 0 : i32
    return %c0_i32, %c0_i32_0 : i32, i32
  }
  func.func @transform_7(%arg0: i32) -> (i32, i32) {
    %c0_i32 = arith.constant 0 : i32
    %c0_i32_0 = arith.constant 0 : i32
    return %arg0, %c0_i32 : i32, i32
  }
}

</mosaic_0001>

<bundles_post_ra>
// kernel: audio_visual_forward.1
= control target key start
LH: loop header
LB: loop body
LE: loop exit
PB: predicated region body
PF: predicated region fallthrough
CT: control target
= control target key end

     0   :  { %vm57_vm0 = vcmask 261120   ;;  %v793_v22 = vmov 0.0   ;;  %vm794_vm1 = vmmov 0   ;;  %vm370_vm2 = vcmask 1043456   ;;  %s969_s5 = inlined_call_operand.vmem [shape: bf16[32,128], index: 5, kind: input, shape index: {}]   ;;  %s970_s0 = inlined_call_operand.vmem [shape: bf16[32,32], index: 0, kind: input, shape index: {}]   ;;  %s971_s3 = inlined_call_operand.vmem [shape: bf16[256,32], index: 3, kind: input, shape index: {}]   ;;  %s972_s1 = inlined_call_operand.vmem [shape: bf16[16,256], index: 1, kind: input, shape index: {}]   ;;  %s973_s4 = inlined_call_operand.vmem [shape: bf16[32,64], index: 4, kind: input, shape index: {}]   ;;  %s974_s2 = inlined_call_operand.vmem [shape: bf16[16,8], index: 2, kind: input, shape index: {}]   ;;  %s975_s6 = inlined_call_operand.vmem [shape: bf16[64,32], index: 6, kind: input, shape index: {}]   ;;  %s976_s7 = inlined_call_operand.vmem [shape: f32[32,32], index: 7, kind: output, shape index: {}]  }
   0x1   :  { %v743_v0 = vld [vmem:[%s969_s5 + $0x8] sm:$0xff]   ;;  %v744_v1 = vld [vmem:[%s969_s5] sm:$0xff]   ;;  %v747_v3 = vld [vmem:[%s971_s3 + $0x78] sm:$0xff]   ;;  %708 = vmatprep.subr.bf16.mxu0 %v793_v22  ;;  %712 = vmatprep.mubr.msk.bf16.mxu0 %vm794_vm1, %v793_v22  ;;  %vm366_vm3 = vcmask 64512   ;;  %vm557_vm4 = vcmask 523264  }
   0x2   :  { %700 = vmatprep.subr.bf16.mxu1 %v743_v0  ;;  %v745_v2 = vld [vmem:[%s970_s0] sm:$0xff]   ;;  %v746_v4 = vld [vmem:[%s970_s0 + $0x8] sm:$0xff]   ;;  %v748_v5 = vld [vmem:[%s971_s3 + $0x38] sm:$0xff]  }
   0x3   :  { %701 = vmatpush3.bf16.msra.mxu1 %v743_v0  ;;  %704 = vmatprep.mubr.msk.bf16.mxu1 %vm57_vm0, %v745_v2  ;;  %v749_v6 = vld [vmem:[%s971_s3 + $0x70] sm:$0xff]   ;;  %v751_v8 = vld [vmem:[%s971_s3 + $0x68] sm:$0xff]   ;;  %v753_v10 = vld [vmem:[%s971_s3 + $0x60] sm:$0xff]  }
   0x4   :  { %702 = vmatprep.subr.bf16.mxu1 %v744_v1  ;;  %v750_v7 = vld [vmem:[%s971_s3 + $0x30] sm:$0xff]   ;;  %v752_v9 = vld [vmem:[%s971_s3 + $0x28] sm:$0xff]   ;;  %v754_v11 = vld [vmem:[%s971_s3 + $0x20] sm:$0xff]  }
   0x5   :  { %v755_v12 = vld [vmem:[%s971_s3 + $0x58] sm:$0xff]   ;;  %v765_v13 = vld [vmem:[%s972_s1 + $0x4] ss:$8 sps:$4 sm:$0xff]   ;;  %v757_v15 = vld [vmem:[%s971_s3 + $0x50] sm:$0xff]  }
   0x6   :  { %v756_v14 = vld [vmem:[%s971_s3 + $0x18] sm:$0xff]   ;;  %v758_v16 = vld [vmem:[%s971_s3 + $0x10] sm:$0xff]   ;;  %v759_v17 = vld [vmem:[%s971_s3 + $0x48] sm:$0xff]  }
   0x7   :  { %703 = vmatpush3.bf16.msra.mxu1 %v744_v1  ;;  %v760_v18 = vld [vmem:[%s971_s3 + $0x8] sm:$0xff]   ;;  %v761_v19 = vld [vmem:[%s971_s3 + $0x40] sm:$0xff]  }
   0x8   :  { %665 = vmatprep.subr.bf16.mxu1 %v747_v3  ;;  %v762_v20 = vld [vmem:[%s971_s3] sm:$0xff]   ;;  %v766_v23 = vld [vmem:[%s973_s4 + $0x8] sm:$0xff]  }
   0x9   :  { %v763_v21 = vld [vmem:[%s972_s1] ss:$8 sps:$4 sm:$0xff]   ;;  %709 = vmatpush3.bf16.msra.mxu0 %v766_v23 }
   0xa   :  { %705 = vmatmul.mubr.msk.bf16.vlgmr.msra.gmra.mxu1 %vm57_vm0, %v746_v4  ;;  %v767_v24 = vld [vmem:[%s973_s4] sm:$0xff]   ;;  %710 = vmatprep.subr.bf16.mxu0 %v793_v22  ;;  %s795_s4 = smov 64  }
   0xb   :  { %666 = vmatpush3.bf16.msra.mxu1 %v748_v5  ;;  %285 = vmatprep.mubr.bf16.mxu1 %v765_v13  ;;  %v768_v42 = vld [vmem:[%s974_s2] sm:$0xff]   ;;  %v769_v5 = vld [vmem:[%s975_s6 + $0x18] sm:$0xff]  }
   0xc   :  { %667 = vmatprep.subr.bf16.mxu1 %v749_v6 }
   0xd   :  { %711 = vmatpush3.bf16.msra.mxu0 %v767_v24 }
   0xe   :  { %716 = vmatprep.subr.bf16.mxu0 %v793_v22 }
   0xf   :  { %668 = vmatpush3.bf16.msra.mxu1 %v750_v7 }
  0x10   :  { %669 = vmatprep.subr.bf16.mxu1 %v751_v8  ;;  %v770_v8 = vld [vmem:[%s975_s6 + $0x10] sm:$0xff]  }
  0x13   :  { %670 = vmatpush3.bf16.msra.mxu1 %v752_v9 }
  0x14   :  { %671 = vmatprep.subr.bf16.mxu1 %v753_v10 }
  0x17   :  { %672 = vmatpush3.bf16.msra.mxu1 %v754_v11  ;;  %v771_v11 = vld [vmem:[%s975_s6 + $0x8] sm:$0xff]  }
  0x18   :  { %673 = vmatprep.subr.bf16.mxu1 %v755_v12 }
  0x1b   :  { %674 = vmatpush3.bf16.msra.mxu1 %v756_v14  ;;  %v772_v14 = vld [vmem:[%s975_s6] sm:$0xff]  }
  0x1c   :  { %675 = vmatprep.subr.bf16.mxu1 %v757_v15 }
  0x1f   :  { %676 = vmatpush3.bf16.msra.mxu1 %v758_v16 }
  0x20   :  { %677 = vmatprep.subr.bf16.mxu1 %v759_v17 }
  0x23   :  { %678 = vmatpush3.bf16.msra.mxu1 %v760_v18 }
  0x24   :  { %679 = vmatprep.subr.bf16.mxu1 %v761_v19 }
  0x27   :  { %680 = vmatpush3.bf16.msra.mxu1 %v762_v20 }
  0x2a   :  { %286 = vmatmul.mubr.bf16.vlgmr.msra.gmra.mxu1 %v763_v21 }
  0xca   :  { %v911_v25 = vpop.f32.mrf.mxu1 }
  0xcc   :  { %v913_v26 = vpop.f32.mrf.mxu1 }
  0xce   :  { %v915_v27 = vpop.f32.mrf.mxu1 }
  0xd0   :  { %v917_v28 = vpop.f32.mrf.mxu1 }
  0xea   :  { %v681_v29 = vpop.f32.mrf.mxu1 }
  0xec   :  { %v682_v30 = vpop.f32.mrf.mxu1 }
  0xed   :  { %v683_v31 = vadd.f32 %v682_v30, %v681_v29 }
  0xee   :  { %v684_v32 = vpop.f32.mrf.mxu1 }
  0xef   :  { %773 = vtanh.f32 %v683_v31 }
  0xf0   :  { %v685_v33 = vpop.f32.mrf.mxu1 }
  0xf1   :  { %v686_v34 = vadd.f32 %v685_v33, %v684_v32 }
  0xf3   :  { %775 = vtanh.f32 %v686_v34 }
  0xfc   :  { %v774_v35 = vpop.eup %773 }
 0x100   :  { %v776_v36 = vpop.eup %775 }
 0x101   :  { %v296_v37 = vpack.c.bf16 %v776_v36, %v774_v35 }
 0x103   :  { %713 = vmatmul.mubr.msk.bf16.vlgmr.msra.gmra.mxu0 %vm57_vm0, %v296_v37 }
 0x104   :  { %718 = vmatprep.mubr.msk.bf16.mxu0 %vm794_vm1, %v793_v22 }
 0x1c3   :  { %v350_v38 = vpop.f32.mrf.mxu0 }
 0x1c4   :  { %v357_v39 = vpack.c.bf16 %v350_v38, %v350_v38 }
 0x1c5   :  { %v714_v40 = vpop.f32.mrf.mxu0 }
 0x1c6   :  { %v372_v41 = vsel %vm370_vm2, %v357_v39, 0 }
 0x1c7   :  { %v353_v43 = vpop.f32.mrf.mxu0  ;;  %717 = vmatpush3.bf16.msra.mxu0 %v372_v41 }
 0x1c8   :  { %v358_v44 = vpack.c.bf16 %v353_v43, %v353_v43  ;;  %722 = vmatprep.subr.bf16.mxu0 %v793_v22 }
 0x1c9   :  { %v715_v45 = vpop.f32.mrf.mxu0 }
 0x1ca   :  { %v416_v46 = vsel %vm370_vm2, %v358_v44, 0  ;;  %719 = vmatmul.mubr.msk.bf16.vlgmr.msra.gmra.mxu0 %vm366_vm3, %v768_v42 }
 0x1cb   :  { %723 = vmatpush3.bf16.msra.mxu0 %v416_v46  ;;  %724 = vmatprep.mubr.msk.bf16.mxu0 %vm794_vm1, %v793_v22 }
 0x1cc   :  { %728 = vmatprep.subr.bf16.mxu0 %v769_v5 }
 0x1d2   :  { %725 = vmatmul.mubr.msk.bf16.vlgmr.msra.gmra.mxu0 %vm366_vm3, %v768_v42 }
 0x1d3   :  { %729 = vmatpush3.bf16.msra.mxu0 %v769_v5 }
 0x1d4   :  { %730 = vmatprep.subr.bf16.mxu0 %v770_v8 }
 0x1d7   :  { %731 = vmatpush3.bf16.msra.mxu0 %v770_v8 }
 0x1d8   :  { %732 = vmatprep.subr.bf16.mxu0 %v771_v11 }
 0x1db   :  { %733 = vmatpush3.bf16.msra.mxu0 %v771_v11 }
 0x1dc   :  { %734 = vmatprep.subr.bf16.mxu0 %v772_v14 }
 0x1df   :  { %735 = vmatpush3.bf16.msra.mxu0 %v772_v14 }
 0x28a   :  { %v408_v47 = vpop.f32.mrf.mxu0 }
 0x28b   :  { %463 = vrot.lane.b32.xlu0 %v408_v47, %s795_s4 }
 0x28c   :  { %v720_v48 = vpop.f32.mrf.mxu0 }
 0x28e   :  { %v411_v49 = vpop.f32.mrf.mxu0 }
 0x28f   :  { %465 = vrot.lane.b32.xlu0 %v411_v49, %s795_s4 }
 0x290   :  { %v721_v50 = vpop.f32.mrf.mxu0 }
 0x292   :  { %v452_v51 = vpop.f32.mrf.mxu0 }
 0x293   :  { %467 = vrot.lane.b32.xlu1 %v452_v51, %s795_s4 }
 0x294   :  { %v726_v52 = vpop.f32.mrf.mxu0 }
 0x296   :  { %v455_v53 = vpop.f32.mrf.mxu0 }
 0x297   :  { %469 = vrot.lane.b32.xlu1 %v455_v53, %s795_s4 }
 0x298   :  { %v727_v54 = vpop.f32.mrf.mxu0 }
 0x2fd   :  { %v464_v55 = vpop.permute.xlu0 %463 }
 0x2fe   :  { %v475_v56 = vadd.f32 %v464_v55, %v913_v26 }
 0x300   :  { %v651_v57 = vmul.f32 -1.442695, %v475_v56 }
 0x301   :  { %v466_v58 = vpop.permute.xlu0 %465 }
 0x302   :  { %777 = vpow2.f32 %v651_v57  ;;  %v476_v59 = vadd.f32 %v466_v58, %v917_v28 }
 0x304   :  { %v652_v60 = vmul.f32 -1.442695, %v476_v59 }
 0x305   :  { %v468_v61 = vpop.permute.xlu1 %467 }
 0x306   :  { %779 = vpow2.f32 %v652_v60  ;;  %v477_v62 = vadd.f32 %v911_v25, %v468_v61 }
 0x308   :  { %v653_v63 = vmul.f32 -1.442695, %v477_v62 }
 0x309   :  { %v470_v0 = vpop.permute.xlu1 %469 }
 0x30a   :  { %781 = vpow2.f32 %v653_v63  ;;  %v478_v1 = vadd.f32 %v915_v27, %v470_v0 }
 0x30c   :  { %v654_v2 = vmul.f32 -1.442695, %v478_v1 }
 0x30e   :  { %783 = vpow2.f32 %v654_v2 }
 0x30f   :  { %v778_v3 = vpop.eup %777 }
 0x310   :  { %v491_v4 = vadd.f32 1.0, %v778_v3 }
 0x312   :  { %785 = vrcp.f32 %v491_v4 }
 0x313   :  { %v780_v6 = vpop.eup %779 }
 0x314   :  { %v492_v7 = vadd.f32 1.0, %v780_v6 }
 0x316   :  { %787 = vrcp.f32 %v492_v7 }
 0x317   :  { %v782_v9 = vpop.eup %781 }
 0x318   :  { %v493_v10 = vadd.f32 1.0, %v782_v9 }
 0x31a   :  { %789 = vrcp.f32 %v493_v10 }
 0x31b   :  { %v784_v12 = vpop.eup %783 }
 0x31c   :  { %v494_v13 = vadd.f32 1.0, %v784_v12 }
 0x31e   :  { %791 = vrcp.f32 %v494_v13 }
 0x31f   :  { %v786_v15 = vpop.eup %785 }
 0x320   :  { %507 = vrot.lane.b32.xlu0 %v786_v15, %s795_s4 }
 0x323   :  { %v788_v16 = vpop.eup %787 }
 0x324   :  { %509 = vrot.lane.b32.xlu1 %v788_v16, %s795_s4 }
 0x327   :  { %v790_v17 = vpop.eup %789 }
 0x328   :  { %511 = vrot.lane.b32.xlu0 %v790_v17, %s795_s4 }
 0x32b   :  { %v792_v18 = vpop.eup %791 }
 0x32c   :  { %513 = vrot.lane.b32.xlu1 %v792_v18, %s795_s4 }
 0x392   :  { %v508_v19 = vpop.permute.xlu0 %507 }
 0x393   :  { %v519_v21 = vmul.f32 %v508_v19, %v913_v26 }
 0x396   :  { %v510_v20 = vpop.permute.xlu1 %509 }
 0x397   :  { %v520_v22 = vmul.f32 %v510_v20, %v917_v28 }
 0x399   :  { %v523_v23 = vpack.c.bf16 %v520_v22, %v519_v21 }
 0x39a   :  { %v512_v24 = vpop.permute.xlu0 %511 }
 0x39b   :  { %736 = vmatprep.mubr.msk.bf16.mxu0 %vm557_vm4, %v523_v23  ;;  %v521_v30 = vmul.f32 %v911_v25, %v512_v24 }
 0x39e   :  { %v514_v29 = vpop.permute.xlu1 %513 }
 0x39f   :  { %v522_v31 = vmul.f32 %v915_v27, %v514_v29 }
 0x3a1   :  { %v524_v32 = vpack.c.bf16 %v522_v31, %v521_v30 }
 0x3a3   :  { %737 = vmatmul.mubr.msk.bf16.vlgmr.msra.gmra.mxu0 %vm557_vm4, %v524_v32 }
 0x463   :  { %v738_v33 = vpop.f32.mrf.mxu0 }
 0x464   :  { %615 = vst.msk [vmem:[%s976_s7 + $0x10] sm:$0xff] %vm57_vm0, %v738_v33 }
 0x465   :  { %v598_v26 = vpop.f32.mrf.mxu0 }
 0x466   :  { %613 = vst.msk [vmem:[%s976_s7] sm:$0xff] %vm57_vm0, %v598_v26 }
 0x467   :  { %v739_v28 = vpop.f32.mrf.mxu0 }
 0x468   :  { %616 = vst.msk [vmem:[%s976_s7 + $0x18] sm:$0xff] %vm57_vm0, %v739_v28 }
 0x469   :  { %v601_v25 = vpop.f32.mrf.mxu0 }
 0x46a   :  { %614 = vst.msk [vmem:[%s976_s7 + $0x8] sm:$0xff] %vm57_vm0, %v601_v25 }

</bundles_post_ra>
